<compile_context>
chip_gen: v7x
topology: tpu7x:2x2x1
jax: 0.10.0
libtpu: 0.0.40
codegen_flags: <defaults>
</compile_context>

<pallas_src>
import functools
import math

import jax
import jax.numpy as jnp
from jax.experimental import pallas as pl
from jax.experimental.pallas import tpu as pltpu

_LANE = 128
_SUBLANE = 8


def _round_up(n: int, m: int) -> int:
    return ((n + m - 1) // m) * m


def _apply_activation(y, name: str):
    name = name.lower()
    if name == "tanh":
        return jnp.tanh(y)
    if name == "relu":
        return jnp.maximum(y, 0.0)
    if name == "sigmoid":
        return jax.nn.sigmoid(y)
    if name == "swish":
        return y * jax.nn.sigmoid(y)
    if name == "gelu":
        return jax.nn.gelu(y, approximate=False)  # PyTorch nn.GELU default = exact erf
    raise ValueError(f"Unsupported activation: {name}")


# ---------------------------------------------------------------------------
# Fused kernels (one pallas_call for the whole residual block)
# ---------------------------------------------------------------------------

def _resblock_kernel_packed_skip(x_ref, w1s_ref, b1s_ref, w2_ref, b2_ref, o_ref,
                                 *, activation, dout_p):
    # w1s = [w1 | w_skip] (Din_p, 2*Dout_p): one 256-wide MXU push serves both
    # layer1 and the Linear skip, reusing the x operand.
    x = x_ref[...]
    hs = jnp.dot(x, w1s_ref[...], preferred_element_type=jnp.float32) + b1s_ref[...]
    h = _apply_activation(hs[:, :dout_p], activation)       # layer1 + act (f32 epilogue)
    ident = hs[:, dout_p:]                                   # skip path (f32)
    out = jnp.dot(h.astype(w2_ref.dtype), w2_ref[...],
                  preferred_element_type=jnp.float32) + b2_ref[...]
    o_ref[...] = _apply_activation(out + ident, activation).astype(o_ref.dtype)


def _resblock_kernel_linear_skip(x_ref, w1_ref, b1_ref, w2_ref, b2_ref, ws_ref, bs_ref,
                                 o_ref, *, activation):
    x = x_ref[...]
    h = jnp.dot(x, w1_ref[...], preferred_element_type=jnp.float32) + b1_ref[...]
    h = _apply_activation(h, activation)
    out = jnp.dot(h.astype(w2_ref.dtype), w2_ref[...],
                  preferred_element_type=jnp.float32) + b2_ref[...]
    ident = jnp.dot(x, ws_ref[...], preferred_element_type=jnp.float32) + bs_ref[...]
    o_ref[...] = _apply_activation(out + ident, activation).astype(o_ref.dtype)


def _resblock_kernel_identity_skip(x_ref, w1_ref, b1_ref, w2_ref, b2_ref, o_ref,
                                   *, activation):
    x = x_ref[...]
    h = jnp.dot(x, w1_ref[...], preferred_element_type=jnp.float32) + b1_ref[...]
    h = _apply_activation(h, activation)
    out = jnp.dot(h.astype(w2_ref.dtype), w2_ref[...],
                  preferred_element_type=jnp.float32) + b2_ref[...]
    ident = x.astype(jnp.float32)                             # identity skip
    o_ref[...] = _apply_activation(out + ident, activation).astype(o_ref.dtype)


# ---------------------------------------------------------------------------
# Parameter packing (done once, outside the per-forward path)
# ---------------------------------------------------------------------------

def init_residual_block_params(key, input_dim, output_dim, dtype=jnp.float32):
    """Matches nn.Linear default init (uniform +-1/sqrt(fan_in)); weights stored [in, out]."""
    def linear(k, fan_in, fan_out):
        kw, kb = jax.random.split(k)
        bound = 1.0 / math.sqrt(fan_in)
        w = jax.random.uniform(kw, (fan_in, fan_out), dtype, -bound, bound)
        b = jax.random.uniform(kb, (fan_out,), dtype, -bound, bound)
        return w, b

    k1, k2, k3 = jax.random.split(key, 3)
    w1, b1 = linear(k1, input_dim, output_dim)
    w2, b2 = linear(k2, output_dim, output_dim)
    params = {"w1": w1, "b1": b1, "w2": w2, "b2": b2}
    if input_dim != output_dim:
        ws, bs = linear(k3, input_dim, output_dim)
        params["w_skip"] = ws
        params["b_skip"] = bs
    return params


def pack_residual_block_params(params, mxu_dtype=jnp.bfloat16):
    """Pad feature dims to multiples of 128 and cast MXU operands ONCE.

    Biases stay f32 (epilogue is f32). When Dout_p == 128 and the skip is
    Linear, [w1 | w_skip] / [b1 | b_skip] are concatenated so layer1 + skip
    share a single 256-wide MXU matmul.
    """
    w1, b1 = params["w1"], params["b1"]
    w2, b2 = params["w2"], params["b2"]
    Din, Dout = w1.shape
    has_skip = "w_skip" in params
    Din_p = _round_up(Din, _LANE)
    Dout_p = _round_up(Dout, _LANE)

    def pad2(a, rows, cols, dt):
        a = a.astype(dt)
        return jnp.pad(a, ((0, rows - a.shape[0]), (0, cols - a.shape[1])))

    w1_p = pad2(w1, Din_p, Dout_p, mxu_dtype)
    b1_p = pad2(b1.reshape(1, -1), 1, Dout_p, jnp.float32)
    w2_p = pad2(w2, Dout_p, Dout_p, mxu_dtype)
    b2_p = pad2(b2.reshape(1, -1), 1, Dout_p, jnp.float32)

    packed = {
        "Din": Din, "Dout": Dout, "Din_p": Din_p, "Dout_p": Dout_p,
        "mxu_dtype": mxu_dtype, "has_skip": has_skip,
        "w2": w2_p, "b2": b2_p,
    }
    if has_skip and Dout_p == _LANE:
        # Fill the 256-wide MXU (v6e/v7x) with one [w1 | w_skip] push.
        ws_p = pad2(params["w_skip"], Din_p, Dout_p, mxu_dtype)
        bs_p = pad2(params["b_skip"].reshape(1, -1), 1, Dout_p, jnp.float32)
        packed["fused_skip"] = True
        packed["w1s"] = jnp.concatenate([w1_p, ws_p], axis=1)
        packed["b1s"] = jnp.concatenate([b1_p, bs_p], axis=1)
    else:
        packed["fused_skip"] = False
        packed["w1"] = w1_p
        packed["b1"] = b1_p
        if has_skip:
            packed["w_skip"] = pad2(params["w_skip"], Din_p, Dout_p, mxu_dtype)
            packed["b_skip"] = pad2(params["b_skip"].reshape(1, -1), 1, Dout_p, jnp.float32)
    return packed


# ---------------------------------------------------------------------------
# Fused forward pass
# ---------------------------------------------------------------------------

def residual_block_forward(x, packed, activation: str = "tanh"):
    """Fused ResidualBlock forward using pre-packed params (pack_residual_block_params)."""
    B, Din = x.shape
    assert Din == packed["Din"], "x feature dim does not match packed params"
    Dout, Din_p, Dout_p = packed["Dout"], packed["Din_p"], packed["Dout_p"]
    mxu_dtype = packed["mxu_dtype"]
    out_dtype = x.dtype

    # --- generation-aware VMEM budget (~48 MiB on v7x, ~96 MiB on v5e/v6e) ------
    try:
        phys_vmem = int(getattr(pltpu.get_tpu_info(), "vmem_capacity_bytes", 64 << 20))
    except Exception:
        phys_vmem = 64 << 20
    vmem_limit = min((phys_vmem * 3) // 4, 100 << 20)

    # --- batch tiling: >= 2 parallel tiles when possible (v7x megacore) ---------
    if B <= _SUBLANE:
        TB = _SUBLANE
    elif B <= 1024:
        TB = min(512, _round_up((B + 1) // 2, _SUBLANE))
    else:
        TB = 512

    weight_keys = [k for k in ("w1", "w1s", "w2", "w_skip", "b1", "b1s", "b2", "b_skip")
                   if k in packed]
    weight_bytes = sum(int(packed[k].size) * packed[k].dtype.itemsize for k in weight_keys)
    in_itemsize = jnp.dtype(mxu_dtype).itemsize
    out_itemsize = jnp.dtype(out_dtype).itemsize
    wide = 2 * Dout_p if packed["fused_skip"] else Dout_p

    def vmem_est(tb):
        act = 2 * tb * Din_p * in_itemsize + 2 * tb * Dout_p * out_itemsize   # dbl-buffered x / out
        temps = 4 * tb * (wide + 2 * Dout_p)                                  # rough f32 intermediates
        return weight_bytes + act + temps

    while TB > _SUBLANE and vmem_est(TB) > vmem_limit:
        TB = max(_SUBLANE, _round_up(TB // 2, _SUBLANE))
    # TODO(synk): add a K/N-tiled fallback (extra 'arbitrary' grid axis + f32 VMEM
    # accumulator) for feature dims where resident weights alone exceed the v7x budget.

    B_p = _round_up(B, TB)

    # --- avoid per-call pad HBM copies when already aligned ---------------------
    x_p = x.astype(mxu_dtype)
    if (B_p != B) or (Din_p != Din):
        x_p = jnp.pad(x_p, ((0, B_p - B), (0, Din_p - Din)))

    grid = (B_p // TB,)
    x_spec = pl.BlockSpec((TB, Din_p), lambda i: (i, 0))
    o_spec = pl.BlockSpec((TB, Dout_p), lambda i: (i, 0))

    def resident(shape):
        # Constant index_map -> fetched once, stays in VMEM across batch tiles;
        # single-buffered so it doesn't occupy 2x its size.
        if hasattr(pl, "Buffered"):
            return pl.BlockSpec(shape, lambda i: (0, 0), pipeline_mode=pl.Buffered(1))
        return pl.BlockSpec(shape, lambda i: (0, 0))

    if packed["fused_skip"]:
        kernel = functools.partial(_resblock_kernel_packed_skip,
                                   activation=activation, dout_p=Dout_p)
        in_specs = [x_spec,
                    resident((Din_p, 2 * Dout_p)), resident((1, 2 * Dout_p)),
                    resident((Dout_p, Dout_p)), resident((1, Dout_p))]
        operands = (x_p, packed["w1s"], packed["b1s"], packed["w2"], packed["b2"])
        skip_flops = 2 * B_p * Din_p * Dout_p
    elif packed["has_skip"]:
        kernel = functools.partial(_resblock_kernel_linear_skip, activation=activation)
        in_specs = [x_spec,
                    resident((Din_p, Dout_p)), resident((1, Dout_p)),
                    resident((Dout_p, Dout_p)), resident((1, Dout_p)),
                    resident((Din_p, Dout_p)), resident((1, Dout_p))]
        operands = (x_p, packed["w1"], packed["b1"], packed["w2"], packed["b2"],
                    packed["w_skip"], packed["b_skip"])
        skip_flops = 2 * B_p * Din_p * Dout_p
    else:
        kernel = functools.partial(_resblock_kernel_identity_skip, activation=activation)
        in_specs = [x_spec,
                    resident((Din_p, Dout_p)), resident((1, Dout_p)),
                    resident((Dout_p, Dout_p)), resident((1, Dout_p))]
        operands = (x_p, packed["w1"], packed["b1"], packed["w2"], packed["b2"])
        skip_flops = 0

    flops = 2 * B_p * Din_p * Dout_p + 2 * B_p * Dout_p * Dout_p + skip_flops
    transcendentals = 0 if activation.lower() == "relu" else 2 * B_p * Dout_p
    bytes_accessed = (int(x_p.size) * in_itemsize + weight_bytes
                      + B_p * Dout_p * out_itemsize)

    out_p = pl.pallas_call(
        kernel,
        out_shape=jax.ShapeDtypeStruct((B_p, Dout_p), out_dtype),
        grid=grid,
        in_specs=in_specs,
        out_specs=o_spec,
        compiler_params=pltpu.CompilerParams(
            dimension_semantics=("parallel",),   # batch tiles independent -> megacore on v7x
            vmem_limit_bytes=int(vmem_limit),
        ),
        cost_estimate=pl.CostEstimate(flops=flops,
                                      transcendentals=transcendentals,
                                      bytes_accessed=bytes_accessed),
    )(*operands)

    if (B_p != B) or (Dout_p != Dout):
        return out_p[:B, :Dout]
    return out_p


# ---------------------------------------------------------------------------
# Pure-JAX reference
# ---------------------------------------------------------------------------

def residual_block_ref(x, params, activation="tanh"):
    if "w_skip" in params:
        ident = x @ params["w_skip"] + params["b_skip"]
    else:
        ident = x
    h = _apply_activation(x @ params["w1"] + params["b1"], activation)
    out = h @ params["w2"] + params["b2"]
    return _apply_activation(out + ident, activation)


if __name__ == "__main__":
    key = jax.random.PRNGKey(0)
    k_x1, k_p1, k_x2, k_p2 = jax.random.split(key, 4)

    # Case 1: input_dim != output_dim -> Linear skip (packed [w1|w_skip] MXU path)
    B, Din, Dout = 16, 32, 64
    x1 = jax.random.normal(k_x1, (B, Din), dtype=jnp.float32)
    p1 = init_residual_block_params(k_p1, Din, Dout)
    r1 = residual_block_ref(x1, p1, activation="tanh")

    # bf16 MXU operands (default fast path) -> loosened tolerance vs f32 reference
    packed1_bf16 = pack_residual_block_params(p1, mxu_dtype=jnp.bfloat16)
    y1 = jax.block_until_ready(residual_block_forward(x1, packed1_bf16, activation="tanh"))
    assert y1.shape == (B, Dout)
    assert jnp.allclose(y1, r1, atol=5e-2, rtol=5e-2), float(jnp.abs(y1 - r1).max())

    # f32 MXU operands (strict-accuracy path)
    packed1_f32 = pack_residual_block_params(p1, mxu_dtype=jnp.float32)
    y1f = jax.block_until_ready(residual_block_forward(x1, packed1_f32, activation="tanh"))
    assert jnp.allclose(y1f, r1, atol=1e-5, rtol=1e-5), float(jnp.abs(y1f - r1).max())

    # Case 2: input_dim == output_dim -> Identity skip connection
    D = 64
    x2 = jax.random.normal(k_x2, (B, D), dtype=jnp.float32)
    p2 = init_residual_block_params(k_p2, D, D)
    r2 = residual_block_ref(x2, p2, activation="tanh")
    packed2_f32 = pack_residual_block_params(p2, mxu_dtype=jnp.float32)
    y2 = jax.block_until_ready(residual_block_forward(x2, packed2_f32, activation="tanh"))
    assert y2.shape == (B, D)
    assert jnp.allclose(y2, r2, atol=1e-5, rtol=1e-5), float(jnp.abs(y2 - r2).max())

    print("KERNEL_OK")
</pallas_src>

<mosaic_0001>
module attributes {stable_mosaic.version = 11 : i64} {
  func.func @_resblock_kernel_packed_skip(%arg0: i32, %arg1: memref<8x128xbf16, #tpu.memory_space<vmem>>, %arg2: memref<128x256xbf16, #tpu.memory_space<vmem>>, %arg3: memref<1x256xf32, #tpu.memory_space<vmem>>, %arg4: memref<128x128xbf16, #tpu.memory_space<vmem>>, %arg5: memref<1x128xf32, #tpu.memory_space<vmem>>, %arg6: memref<8x128xf32, #tpu.memory_space<vmem>>) attributes {dimension_semantics = [#tpu.dimension_semantics<parallel>], iteration_bounds = array<i64: 2>, scalar_prefetch = 0 : i64, scratch_operands = 0 : i64, tpu.core_type = #tpu.core_type<tc>, window_params = [{transform_indices = @transform_0, window_bounds = array<i64: 8, 128>}, {pipeline_mode = #tpu.pipeline_mode<synchronous>, transform_indices = @transform_1, window_bounds = array<i64: 128, 256>}, {pipeline_mode = #tpu.pipeline_mode<synchronous>, transform_indices = @transform_2, window_bounds = array<i64: 1, 256>}, {pipeline_mode = #tpu.pipeline_mode<synchronous>, transform_indices = @transform_3, window_bounds = array<i64: 128, 128>}, {pipeline_mode = #tpu.pipeline_mode<synchronous>, transform_indices = @transform_4, window_bounds = array<i64: 1, 128>}, {transform_indices = @transform_5, window_bounds = array<i64: 8, 128>}]} {
    %c0 = arith.constant 0 : index
    %c0_0 = arith.constant 0 : index
    %0 = vector.load %arg1[%c0, %c0_0] : memref<8x128xbf16, #tpu.memory_space<vmem>>, vector<8x128xbf16>
    %c0_1 = arith.constant 0 : index
    %c0_2 = arith.constant 0 : index
    %1 = vector.load %arg2[%c0_1, %c0_2] : memref<128x256xbf16, #tpu.memory_space<vmem>>, vector<128x256xbf16>
    %cst = arith.constant dense<0.000000e+00> : vector<8x256xf32>
    %2 = tpu.matmul %0, %1, %cst {dimension_numbers = #tpu.dot_dimension_numbers<[1], [0], [0], [1], [0, 0, 1, 1], [], []>} : vector<8x128xbf16>, vector<128x256xbf16>, vector<8x256xf32> -> vector<8x256xf32>
    %c0_3 = arith.constant 0 : index
    %c0_4 = arith.constant 0 : index
    %3 = vector.load %arg3[%c0_3, %c0_4] : memref<1x256xf32, #tpu.memory_space<vmem>>, vector<1x256xf32>
    %4 = vector.broadcast %3 : vector<1x256xf32> to vector<8x256xf32>
    %5 = arith.addf %2, %4 : vector<8x256xf32>
    %6 = vector.extract_strided_slice %5 {offsets = [0, 0], sizes = [8, 128], strides = [1, 1]} : vector<8x256xf32> to vector<8x128xf32>
    %7 = math.tanh %6 : vector<8x128xf32>
    %8 = vector.extract_strided_slice %5 {offsets = [0, 128], sizes = [8, 128], strides = [1, 1]} : vector<8x256xf32> to vector<8x128xf32>
    %9 = arith.truncf %7 : vector<8x128xf32> to vector<8x128xbf16>
    %c0_5 = arith.constant 0 : index
    %c0_6 = arith.constant 0 : index
    %10 = vector.load %arg4[%c0_5, %c0_6] : memref<128x128xbf16, #tpu.memory_space<vmem>>, vector<128x128xbf16>
    %cst_7 = arith.constant dense<0.000000e+00> : vector<8x128xf32>
    %11 = tpu.matmul %9, %10, %cst_7 {dimension_numbers = #tpu.dot_dimension_numbers<[1], [0], [0], [1], [0, 0, 1, 1], [], []>} : vector<8x128xbf16>, vector<128x128xbf16>, vector<8x128xf32> -> vector<8x128xf32>
    %c0_8 = arith.constant 0 : index
    %c0_9 = arith.constant 0 : index
    %12 = vector.load %arg5[%c0_8, %c0_9] : memref<1x128xf32, #tpu.memory_space<vmem>>, vector<1x128xf32>
    %13 = vector.broadcast %12 : vector<1x128xf32> to vector<8x128xf32>
    %14 = arith.addf %11, %13 : vector<8x128xf32>
    %15 = arith.addf %14, %8 : vector<8x128xf32>
    %16 = math.tanh %15 : vector<8x128xf32>
    %c0_10 = arith.constant 0 : index
    %c0_11 = arith.constant 0 : index
    %17 = vector.load %arg6[%c0_10, %c0_11] : memref<8x128xf32, #tpu.memory_space<vmem>>, vector<8x128xf32>
    tpu.vector_store %arg6[%c0_10, %c0_11], %16 {strides = array<i32>} : memref<8x128xf32, #tpu.memory_space<vmem>>, vector<8x128xf32>,
    return
  }
  func.func @transform_0(%arg0: i32) -> (i32, i32) {
    %c0_i32 = arith.constant 0 : i32
    %c0_i32_0 = arith.constant 0 : i32
    return %arg0, %c0_i32 : i32, i32
  }
  func.func @transform_1(%arg0: i32) -> (i32, i32) {
    %c0_i32 = arith.constant 0 : i32
    %c0_i32_0 = arith.constant 0 : i32
    %c0_i32_1 = arith.constant 0 : i32
    return %c0_i32, %c0_i32_0 : i32, i32
  }
  func.func @transform_2(%arg0: i32) -> (i32, i32) {
    %c0_i32 = arith.constant 0 : i32
    %c0_i32_0 = arith.constant 0 : i32
    %c0_i32_1 = arith.constant 0 : i32
    return %c0_i32, %c0_i32_0 : i32, i32
  }
  func.func @transform_3(%arg0: i32) -> (i32, i32) {
    %c0_i32 = arith.constant 0 : i32
    %c0_i32_0 = arith.constant 0 : i32
    %c0_i32_1 = arith.constant 0 : i32
    return %c0_i32, %c0_i32_0 : i32, i32
  }
  func.func @transform_4(%arg0: i32) -> (i32, i32) {
    %c0_i32 = arith.constant 0 : i32
    %c0_i32_0 = arith.constant 0 : i32
    %c0_i32_1 = arith.constant 0 : i32
    return %c0_i32, %c0_i32_0 : i32, i32
  }
  func.func @transform_5(%arg0: i32) -> (i32, i32) {
    %c0_i32 = arith.constant 0 : i32
    %c0_i32_0 = arith.constant 0 : i32
    return %arg0, %c0_i32 : i32, i32
  }
}

</mosaic_0001>

<bundles_post_ra>
// kernel: tpu_custom_call.1
= control target key start
LH: loop header
LB: loop body
LE: loop exit
PB: predicated region body
PF: predicated region fallthrough
CT: control target
= control target key end

     0   :  { %10 = vsyncpa [#allocation3], 0  ;;  %s1257_s0 = inlined_call_operand.hbm [shape: bf16[16,128], index: 0, kind: input, shape index: {}]   ;;  %s1258_s1 = inlined_call_operand.hbm [shape: bf16[128,256], index: 1, kind: input, shape index: {}]   ;;  %s1259_s2 = inlined_call_operand.vmem [shape: f32[1,256], index: 2, kind: input, shape index: {}]   ;;  %s1260_s3 = inlined_call_operand.hbm [shape: bf16[128,128], index: 3, kind: input, shape index: {}]   ;;  %s1261_s4 = inlined_call_operand.vmem [shape: f32[1,128], index: 4, kind: input, shape index: {}]   ;;  %s1262_s5 = inlined_call_operand.hbm [shape: f32[16,128], index: 5, kind: output, shape index: {}]  }
   0x1   :  { %12 = vsyncpa [#allocation3 + $0x1], 0 }
   0x2   :  { %13 = vsyncpa [#allocation6], 0 }
   0x3   :  { %14 = vsyncpa [#allocation4], 0 }
   0x4   :  { %16 = vsyncpa [#allocation4 + $0x1], 0  ;;  %s1018_s18 = smov 0   ;;  %s1020_s19 = smov 0  }
   0x5   :  { %s1022_s20 = smov 0   ;;  %s1024_s21 = smov 0  }
   0x6 LB: > { %s1039_s22 = sadd.s32 4294967295, %s975_s21   ;;  %s639_s23 = sadd.s32 4294967294, %s975_s21   ;;  %s975_s21 = sphi %s1024_s21, %s1282_s21   ;;  %s971_s20 = sphi %s1022_s20, %s1281_s20   ;;  %s967_s19 = sphi %s1020_s19, %s1280_s19   ;;  %s963_s18 = sphi %s1018_s18, %s1279_s18  }
   0x7   : > { %p42_p0 = scmp.ne.s32.totalorder %s967_s19, %s963_s18  ;;  %p1263_p1 = scmp.eq.s32.totalorder %s1039_s22, 0 }
   0x8   : > { %p156_p3 = scmp.eq.s32.totalorder %s639_s23, 1  ;;  %p640_p5 = scmp.ge.s32.totalorder %s975_s21, 1 }
   0x9   : > { %p1048_p4 = por %p1263_p1, %p42_p0  ;;  %p163_p7 = scmp.lt.s32.totalorder %s975_s21, 3 }
   0xa   : > { %p1053_p6 = por %p156_p3, %p42_p0  ;;  %s977_s27 = smov [#allocation5]  }
   0xb   : > { %s1266_s24 = scalar_select %p1048_p4, 1, 0 }
   0xc   : > { %s1267_s25 = scalar_select %p1053_p6, 1, 0 }
   0xd   : > { %p1058_p8 = pnand %p640_p5, %p163_p7  ;;  %s175_s28 = sshll.u32 %s977_s27, 4  ;;  %s1062_s28 = int_to_ptr.vmem [resolvable:$true] %s175_s28 }
   0xe   : > { %s978_s30 = smov [#allocation7]   ;;  %s819_s9 = scalar_lea.hbm %s1258_s1, 2048 }
   0xf   : > { %p721_p9 = pneg %p1058_p8  ;;  %s191_s6 = sshll.u32 %s978_s30, 4  ;;  %s1073_s6 = int_to_ptr.vmem [resolvable:$true] %s191_s6 }
  0x10   : > { %p820_p12 = scmp.ne.s32.totalorder %s1258_s1, %s819_s9  ;;  %p826_p5 = scmp.lt.u32.totalorder %s819_s9, %s1258_s1 }
  0x11   : > { %p1069_p11 = pnand %p721_p9, %p1263_p1 }
  0x13   : > { %p821_p13 = pneg %p1069_p11 }
  0x15   : > { %p822_p0 = pnand %p821_p13, %p820_p12 }
  0x17   : > { %p823_p3 = pneg %p822_p0 }
  0x19   : > { %p828_p7 = pnand %p826_p5, %p823_p3 }
  0x1b   : > { %831 = shalt.err (!%p828_p7)
}
  0x1c   : > { %s832_s14 = scalar_lea.vmem %s1062_s28, 2048  ;;  %p840_p2 = scmp.lt.s32.totalorder %s1062_s28, %s1062_s28 }
  0x1d   : > { %p833_p9 = scmp.ne.s32.totalorder %s1062_s28, %s832_s14  ;;  %p841_p12 = scmp.lt.s32.totalorder %s832_s14, %s832_s14 }
  0x1f   : > { %p835_p10 = pnand %p833_p9, %p821_p13  ;;  %p842_p0 = por %p841_p12, %p840_p2 }
  0x21   : > { %p836_p1 = pneg %p835_p10 }
  0x23   : > { %p843_p6 = pnand %p842_p0, %p836_p1 }
  0x25   : > { %846 = shalt.err (!%p843_p6)
}
  0x26   : > { %s979_s15 = smov 128   ;;  %s980_s16 = smov 8  }
  0x27   : > { %724 = dma.hbm_to_vmem [thread:$0]  (!%p1069_p11), %s1258_s1, 2048, %s1062_s28, [#allocation6], %s979_s15, %s979_s15, %s980_s16  }
  0x28   : > { %s847_s7 = scalar_lea.hbm %s1260_s3, 1024 }
  0x29   : > { %p848_p2 = scmp.ne.s32.totalorder %s1260_s3, %s847_s7  ;;  %p854_p10 = scmp.lt.u32.totalorder %s847_s7, %s1260_s3 }
  0x2b   : > { %p850_p1 = pnand %p848_p2, %p821_p13 }
  0x2d   : > { %p851_p6 = pneg %p850_p1 }
  0x2f   : > { %p856_p3 = pnand %p854_p10, %p851_p6 }
  0x31   : > { %859 = shalt.err (!%p856_p3)
}
  0x32   : > { %s860_s28 = scalar_lea.vmem %s1073_s6, 1024  ;;  %p868_p12 = scmp.lt.s32.totalorder %s1073_s6, %s1073_s6 }
  0x33   : > { %p861_p5 = scmp.ne.s32.totalorder %s1073_s6, %s860_s28  ;;  %p869_p0 = scmp.lt.s32.totalorder %s860_s28, %s860_s28 }
  0x35   : > { %p863_p7 = pnand %p861_p5, %p821_p13  ;;  %p870_p2 = por %p869_p0, %p868_p12 }
  0x37   : > { %p864_p9 = pneg %p863_p7 }
  0x39   : > { %p871_p1 = pnand %p870_p2, %p864_p9 }
  0x3b   : > { %874 = shalt.err (!%p871_p1)
}
  0x3c   : > { %s981_s12 = smov 64   ;;  %s982_s13 = smov 4  }
  0x3d   : > { %727 = dma.hbm_to_vmem [thread:$0]  (!%p1069_p11), %s1260_s3, 1024, %s1073_s6, [#allocation6], %s981_s12, %s981_s12, %s982_s13  }
  0x3e   : > { %s1128_s16 = sadd.s32 1, %s975_s21   ;;  %s29_s23 = sadd.s32 1, %s971_s20 }
  0x3f   : > { %s26_s17 = ssub.s32 %s975_s21, %s1128_s16  ;;  %p36_p6 = scmp.ne.s32.totalorder %s971_s20, %s967_s19 }
  0x40   : > { %p27_p13 = scmp.eq.s32.totalorder %s26_s17, 0  ;;  %p37_p10 = scmp.eq.s32.totalorder %s975_s21, 0 }
  0x41   : > { %p1270_p5 = scmp.eq.s32.totalorder %s1039_s22, 1  ;;  %p738_p9 = scmp.lt.s32.totalorder %s975_s21, 2 }
  0x42   : > { %s1137_s27 = scalar_select %p27_p13, %s971_s20, %s29_s23  }
  0x43   : > { %p38_p3 = por %p37_p10, %p36_p6  ;;  %p1141_p7 = por %p1270_p5, %p36_p6 }
  0x44   : > { %s208_s29 = sand.u32 1, %s971_s20   ;;  %s645_s6 = sshll.u32 %s975_s21, 6 }
  0x45   : > { %s1271_s30 = scalar_select %p1141_p7, 1, 0 }
  0x46   : > { %s644_s7 = sshll.u32 %s208_s29, 2  ;;  %s1151_s10 = scalar_lea.hbm %s1257_s0, %s645_s6 }
  0x47   : > { %s212_s11 = scalar_lea.vmem [#allocation2], %s644_s7  ;;  %p1155_p11 = pnand %p738_p9, %p38_p3 }
  0x48   : > { %s219_s28 = sshll.u32 %s212_s11, 4  ;;  %s209_s13 = scalar_lea.sflag [#allocation3], %s208_s29  ;;  %s1153_s28 = int_to_ptr.vmem [resolvable:$true] %s219_s28 }
  0x49   : > { %s875_s14 = scalar_lea.hbm %s1151_s10, 64  ;;  %p877_p0 = pneg %p1155_p11 }
  0x4a   : > { %p876_p12 = scmp.ne.s32.totalorder %s1151_s10, %s875_s14  ;;  %s880_s23 = scalar_lea.hbm %s1257_s0, 128 }
  0x4b   : > { %p881_p13 = scmp.lt.u32.totalorder %s1151_s10, %s1257_s0  ;;  %p882_p6 = scmp.lt.u32.totalorder %s880_s23, %s875_s14 }
  0x4c   : > { %p878_p2 = pnand %p877_p0, %p876_p12  ;;  %p884_p3 = scmp.lt.u32.totalorder %s875_s14, %s1151_s10 }
  0x4d   : > { %p883_p10 = por %p882_p6, %p881_p13 }
  0x4e   : > { %p879_p1 = pneg %p878_p2 }
  0x4f   : > { %p885_p5 = por %p884_p3, %p883_p10 }
  0x51   : > { %p886_p9 = pnand %p885_p5, %p879_p1 }
  0x53   : > { %889 = shalt.err (!%p886_p9)
}
  0x54   : > { %s890_s29 = scalar_lea.vmem %s1153_s28, 64  ;;  %s983_s8 = smov [#allocation2]  }
  0x55   : > { %p891_p12 = scmp.ne.s32.totalorder %s1153_s28, %s890_s29  ;;  %s895_s9 = sshll.u32 %s983_s8, 4  ;;  %s896_s9 = int_to_ptr.vmem [resolvable:$false] %s895_s9 }
  0x56   : > { %s897_s11 = scalar_lea.vmem %s896_s9, 128  ;;  %p898_p4 = scmp.lt.s32.totalorder %s1153_s28, %s896_s9 }
  0x57   : > { %p893_p2 = pnand %p891_p12, %p877_p0  ;;  %p899_p13 = scmp.lt.s32.totalorder %s897_s11, %s890_s29 }
  0x59   : > { %p894_p7 = pneg %p893_p2  ;;  %p900_p6 = por %p899_p13, %p898_p4 }
  0x5b   : > { %p901_p10 = pnand %p900_p6, %p894_p7 }
  0x5d   : > { %904 = shalt.err (!%p901_p10)
}
  0x5e   : > { %731 = dma.hbm_to_vmem [thread:$0]  (!%p1155_p11), %s1151_s10, 64, %s1153_s28, %s209_s13  }
  0x5f   : > { %228 = sbr.rel (%p1058_p8) target bundleno = 608 (0x260), region = 40  ;;  %s1187_s14 = sand.u32 (!%p1058_p8), 1, %s967_s19  }
  0x60   : > { %s647_s15 = sshll.u32 (!%p1058_p8), %s1187_s14, 2  ;;  %s231_s17 = scalar_lea.sflag (!%p1058_p8), [#allocation3], %s1187_s14 }
  0x61   : > { %s1191_s23 = scalar_lea.vmem (!%p1058_p8), [#allocation2], %s647_s15  ;;  %p1273_p4 = scmp.ne.s32.totalorder (!%p1058_p8), %s1266_s24, 0 }
  0x66   : > { %950 = dma.done.wait (%p1273_p4), %s231_s17, 64  }
  0x67   : > { %952 = vsyncadd (%p1273_p4), %s231_s17, 4294967232  ;;  %p1274_p7 = scmp.eq.s32.totalorder %s1039_s22, 0 }
  0x69   : > { %954 = dma.done.wait (%p1274_p7), [#allocation6], 3072   ;;  %p1275_p8 = pmov %p1274_p7 }
  0x6a   : > { %v984_v0 = vmov 0   ;;  %v985_v1 = vmov 0.0   ;;  %v783_v2 = vld [vmem:[#allocation5 + $0x4] ss:$8 sps:$4 sm:$0xff]   ;;  %v785_v3 = vld [vmem:[#allocation5] ss:$8 sps:$4 sm:$0xff]   ;;  %v289_v27 = vlaneseq }
  0x6b   : > { %956 = vsyncadd (%p1275_p8), [#allocation6], 4294964224  ;;  %411 = vmatprep.mubr.bf16.mxu0 %v984_v0  ;;  %689 = vmatprep.subr.bf16.mxu1 %v985_v1  ;;  %v786_v4 = vld [vmem:[#allocation5 + $0x14] ss:$8 sps:$4 sm:$0xff]   ;;  %v788_v5 = vld [vmem:[#allocation5 + $0x10] ss:$8 sps:$4 sm:$0xff]  }
  0x6c   : > { %379 = vmatprep.subr.bf16.mxu0 %v783_v2  ;;  %v789_v6 = vld [vmem:[#allocation5 + $0x24] ss:$8 sps:$4 sm:$0xff]   ;;  %v791_v7 = vld [vmem:[#allocation5 + $0x20] ss:$8 sps:$4 sm:$0xff]   ;;  %v792_v8 = vld [vmem:[#allocation5 + $0x34] ss:$8 sps:$4 sm:$0xff]  }
  0x6d   : > { %380 = vmatpush1.bf16.msra.mxu0 %v785_v3  ;;  %v794_v9 = vld [vmem:[#allocation5 + $0x30] ss:$8 sps:$4 sm:$0xff]   ;;  %v807_v10 = vld [vmem:[#allocation7] sm:$0xff]   ;;  %v808_v13 = vld [vmem:[#allocation7 + $0x8] sm:$0xff]   ;;  %vm986_vm0 = vmmov 0   ;;  %v290_v28 = vshrl.u32 %v289_v27, 7 }
  0x6e   : > { %381 = vmatprep.subr.bf16.mxu0 %v786_v4  ;;  %v795_v11 = vld [vmem:[#allocation5 + $0x44] ss:$8 sps:$4 sm:$0xff]   ;;  %v797_v12 = vld [vmem:[#allocation5 + $0x40] ss:$8 sps:$4 sm:$0xff]   ;;  %690 = vmatpush3.bf16.msra.mxu1 %v807_v10  ;;  %v798_v14 = vld [vmem:[#allocation5 + $0x54] ss:$8 sps:$4 sm:$0xff]  }
  0x6f   : > { %691 = vmatprep.subr.bf16.mxu1 %v985_v1  ;;  %v809_v15 = vld [vmem:[#allocation7 + $0x10] sm:$0xff]   ;;  %v801_v17 = vld [vmem:[#allocation5 + $0x64] ss:$8 sps:$4 sm:$0xff]   ;;  %v810_v18 = vld [vmem:[#allocation7 + $0x18] sm:$0xff]   ;;  %705 = vmatprep.mubr.msk.bf16.mxu1 %vm986_vm0, %v985_v1  ;;  %v291_v29 = vsub.s32 0, %v290_v28  ;;  %v295_v39 = vsub.s32 1, %v290_v28 }
  0x70   : > { %v800_v16 = vld [vmem:[#allocation5 + $0x50] ss:$8 sps:$4 sm:$0xff]   ;;  %v803_v19 = vld [vmem:[#allocation5 + $0x60] ss:$8 sps:$4 sm:$0xff]   ;;  %v804_v20 = vld [vmem:[#allocation5 + $0x74] ss:$8 sps:$4 sm:$0xff]  }
  0x71   : > { %382 = vmatpush1.bf16.msra.mxu0 %v788_v5  ;;  %v806_v21 = vld [vmem:[#allocation5 + $0x70] ss:$8 sps:$4 sm:$0xff]   ;;  %v811_v23 = vld [vmem:[#allocation7 + $0x20] sm:$0xff]   ;;  %v812_v24 = vld [vmem:[#allocation7 + $0x28] sm:$0xff]   ;;  %s650_s12 = sshll.u32 %s1187_s14, 3  ;;  %s677_s13 = sshll.u32 %s1039_s22, 7 }
  0x72   : > { %383 = vmatprep.subr.bf16.mxu0 %v789_v6  ;;  %692 = vmatpush3.bf16.msra.mxu1 %v808_v13  ;;  %v270_v22 = vld [vmem:[%s1191_s23] sm:$0xf]  ;;  %v813_v25 = vld [vmem:[#allocation7 + $0x30] sm:$0xff]   ;;  %s268_s7 = scalar_lea.vmem [#allocation8], %s650_s12  ;;  %s1213_s9 = scalar_lea.hbm %s1262_s5, %s677_s13 }
  0x73   : > { %693 = vmatprep.subr.bf16.mxu1 %v985_v1  ;;  %v814_v26 = vld [vmem:[#allocation7 + $0x38] sm:$0xff]   ;;  %s550_s6 = sshll.u32 %s268_s7, 4  ;;  %s537_s11 = scalar_lea.sflag [#allocation4], %s1187_s14  ;;  %s1215_s6 = int_to_ptr.vmem [resolvable:$true] %s550_s6 }
  0x74   : > { %v287_v30 = vld [vmem:[%s1259_s2] sm:$0x3]  ;;  %s905_s15 = scalar_lea.vmem %s1215_s6, 128  ;;  %p1276_p0 = scmp.ne.s32.totalorder %s1271_s30, 0 }
  0x75   : > { %384 = vmatpush1.bf16.msra.mxu0 %v791_v7  ;;  %v292_v31 = vrot.slane %v287_v30, %v291_v29  ;;  %v296_v40 = vrot.slane %v287_v30, %v295_v39  ;;  %v667_v41 = vld [vmem:[%s1261_s4] ss:$0 sm:$0xff]  ;;  %p906_p11 = scmp.ne.s32.totalorder %s1215_s6, %s905_s15  ;;  %s987_s22 = smov [#allocation8]  }
  0x76   : > { %385 = vmatprep.subr.bf16.mxu0 %v792_v8  ;;  %694 = vmatpush3.bf16.msra.mxu1 %v809_v15  ;;  %s909_s17 = sshll.u32 %s987_s22, 4  ;;  %s910_s17 = int_to_ptr.vmem [resolvable:$false] %s909_s17 }
  0x77   : > { %695 = vmatprep.subr.bf16.mxu1 %v985_v1  ;;  %p907_p1 = pnand %p906_p11, %p1276_p0  ;;  %s911_s23 = scalar_lea.vmem %s910_s17, 256 }
  0x78   : > { %p912_p5 = scmp.lt.s32.totalorder %s1215_s6, %s910_s17  ;;  %p913_p9 = scmp.lt.s32.totalorder %s911_s23, %s905_s15 }
  0x79   : > { %386 = vmatpush1.bf16.msra.mxu0 %v794_v9  ;;  %p908_p3 = pneg %p907_p1 }
  0x7a   : > { %387 = vmatprep.subr.bf16.mxu0 %v795_v11  ;;  %696 = vmatpush3.bf16.msra.mxu1 %v810_v18  ;;  %p914_p12 = por %p913_p9, %p912_p5 }
  0x7b   : > { %697 = vmatprep.subr.bf16.mxu1 %v985_v1 }
  0x7c   : > { %p915_p2 = pnand %p914_p12, %p908_p3 }
  0x7d   : > { %388 = vmatpush1.bf16.msra.mxu0 %v797_v12 }
  0x7e   : > { %389 = vmatprep.subr.bf16.mxu0 %v798_v14  ;;  %698 = vmatpush3.bf16.msra.mxu1 %v811_v23 }
  0x7f   : > { %699 = vmatprep.subr.bf16.mxu1 %v985_v1 }
  0x81   : > { %390 = vmatpush1.bf16.msra.mxu0 %v800_v16 }
  0x82   : > { %391 = vmatprep.subr.bf16.mxu0 %v801_v17  ;;  %700 = vmatpush3.bf16.msra.mxu1 %v812_v24 }
  0x83   : > { %701 = vmatprep.subr.bf16.mxu1 %v985_v1 }
  0x85   : > { %392 = vmatpush1.bf16.msra.mxu0 %v803_v19 }
  0x86   : > { %393 = vmatprep.subr.bf16.mxu0 %v804_v20  ;;  %702 = vmatpush3.bf16.msra.mxu1 %v813_v25 }
  0x87   : > { %703 = vmatprep.subr.bf16.mxu1 %v985_v1 }
  0x89   : > { %394 = vmatpush1.bf16.msra.mxu0 %v806_v21 }
  0x8a   : > { %704 = vmatpush3.bf16.msra.mxu1 %v814_v26 }
  0x8c   : > { %412 = vmatmul.mubr.bf16.vlgmr.msra.gmra.mrb[0].mxu0 %v270_v22 }
 0x15f   : > { %v413_v32 = vpop.f32.mrb[0].mxu0 }
 0x160   : > { %v414_v33 = vadd.f32 %v413_v32, %v292_v31  ;;  %v415_v34 = vpop.f32.mrb[1].mxu0 }
 0x161   : > { %v417_v35 = vpop.f32.mrb[2].mxu0  ;;  %v416_v43 = vadd.f32 %v415_v34, %v296_v40 }
 0x162   : > { %815 = vtanh.f32 %v414_v33  ;;  %v418_v36 = vpop.f32.mrb[3].mxu0 }
 0x16c   : > { %v816_v37 = vpop.eup %815 }
 0x16d   : > { %v421_v38 = vpack.c.bf16 %v816_v37, %v816_v37 }
 0x16f   : > { %706 = vmatmul.mubr.bf16.vlgmr.msra.gmra.mrb[0].mxu1 %v421_v38 }
 0x242   : > { %v527_v42 = vpop.f32.mrb[0].mxu1 }
 0x243   : > { %v528_v44 = vadd.f32 %v667_v41, %v527_v42  ;;  %v707_v45 = vpop.f32.mrb[1].mxu1 }
 0x244   : > { %v530_v46 = vpop.f32.mrb[2].mxu1 }
 0x245   : > { %v533_v47 = vadd.f32 %v528_v44, %v416_v43  ;;  %v708_v48 = vpop.f32.mrb[3].mxu1 }
 0x247   : > { %817 = vtanh.f32 %v533_v47 }
 0x251   : > { %v818_v49 = vpop.eup %817 }
 0x252   : > { %535 = vst [vmem:[%s268_s7] sm:$0xff] %v818_v49 }
 0x253   : > { %918 = shalt.err (!%p915_p2)
}
 0x254   : > { %s919_s14 = scalar_lea.hbm %s1213_s9, 128  ;;  %s923_s10 = scalar_lea.hbm %s1262_s5, 256 }
 0x255   : > { %p920_p13 = scmp.ne.s32.totalorder %s1213_s9, %s919_s14  ;;  %p924_p4 = scmp.lt.u32.totalorder %s1213_s9, %s1262_s5 }
 0x256   : > { %p925_p7 = scmp.lt.u32.totalorder %s923_s10, %s919_s14  ;;  %p927_p11 = scmp.lt.u32.totalorder %s919_s14, %s1213_s9 }
 0x257   : > { %p921_p6 = pnand %p920_p13, %p1276_p0 }
 0x258   : > { %p926_p8 = por %p925_p7, %p924_p4 }
 0x259   : > { %p922_p10 = pneg %p921_p6 }
 0x25a   : > { %p928_p1 = por %p927_p11, %p926_p8 }
 0x25c   : > { %p929_p3 = pnand %p928_p1, %p922_p10 }
 0x25e   : > { %932 = shalt.err (!%p929_p3)
}
 0x25f   : > { %719 = dma.vmem_to_hbm [thread:$0]  (%p1276_p0), %s1215_s6, 128, %s1213_s9, %s537_s11  }
 0x260 PF: > { %s562_s13 = sand.u32 1, %s963_s18   ;;  %p1277_p5 = scmp.ne.s32.totalorder %s1267_s25, 0 }
 0x261   : > { %p1278_p9 = scmp.ge.s32.totalorder %s975_s21, 2  ;;  %s563_s7 = scalar_lea.sflag [#allocation4], %s562_s13 }
 0x263   : > { %p733_p12 = pnand %p1278_p9, %p1277_p5 }
 0x265   : > { %958 = dma.done.wait (!%p733_p12), %s563_s7, 128  }
 0x266   : > { %960 = vsyncadd (!%p733_p12), %s563_s7, 4294967168  ;;  %p19_p2 = scmp.ge.s32.totalorder %s1128_s16, 4   ;;  %s1279_s18 = smov %s967_s19 }
 0x267   : > { %s1280_s19 = smov %s971_s20  ;;  %s1281_s20 = smov %s1137_s27 }
 0x268   : > { %s1282_s21 = smov %s1128_s16  ;;  %21 = sbr.rel (!%p19_p2) target bundleno = 6 (0x6), region = 93 }
 0x26f   :  { %568 = vsyncpa [#allocation3], 1 }
 0x270   :  { %570 = vsyncpa [#allocation3 + $0x1], 1 }
 0x271   :  { %571 = vsyncpa [#allocation6], 1 }
 0x272   :  { %572 = vsyncpa [#allocation4], 1 }
 0x273   :  { %574 = vsyncpa [#allocation4 + $0x1], 1 }

</bundles_post_ra>
